<compile_context>
chip_gen: v5e
topology: v5e:2x2
jax: 0.10.0
libtpu: 0.0.40
codegen_flags: <defaults>
</compile_context>

<pallas_src>
import math

import jax
import jax.numpy as jnp
from jax.experimental import pallas as pl
from jax.experimental.pallas import tpu as pltpu

NUM_FFT = 16
BN_EPS = 1e-5

# Largest flattened-spatial tile per grid step (f32).  Even double-buffered
# (2 bufs * Cin rows * _MAX_TILE * 4B) this stays far under v7x's 32 MiB
# default scoped-VMEM limit for the channel counts in this module (<=16).
_MAX_TILE = 2048


def _pick_tile(hw):
    """Pick a spatial tile satisfying the (8,128) rule: multiple of 128 or
    equal to the full flattened spatial extent."""
    if hw <= _MAX_TILE:
        return hw
    if hw % 128 == 0:
        return _MAX_TILE  # ragged tail block is fine: tile is 128-aligned
    # TODO(synk): very large HW that is not 128-aligned falls back to a single
    # (un-tiled) spatial block per batch element.
    return hw


# ----------------------------- Pallas kernels -------------------------------
def _conv1x1_bn_relu_kernel(x_ref, w_ref, b_ref, o_ref):
    # x_ref: (1, Cin, T)   NCHW slab, spatial flattened (lane-dense T)
    # w_ref: (Cout, Cin)   conv weight with BN scale pre-folded
    # b_ref: (Cout, 1)     folded BN bias
    # o_ref: (1, Cout, T)
    acc = jnp.dot(w_ref[...], x_ref[0], preferred_element_type=jnp.float32)
    y = acc + b_ref[...]
    o_ref[0] = jnp.maximum(y, 0.0).astype(o_ref.dtype)


def _conv1x1_bn_relu_2in_kernel(x1_ref, x2_ref, w1_ref, w2_ref, b_ref, o_ref):
    # Fused channel-concat variant: concat(x1, x2) @ w == x1 @ w1 + x2 @ w2.
    acc = jnp.dot(w1_ref[...], x1_ref[0], preferred_element_type=jnp.float32)
    acc = acc + jnp.dot(w2_ref[...], x2_ref[0],
                        preferred_element_type=jnp.float32)
    y = acc + b_ref[...]
    o_ref[0] = jnp.maximum(y, 0.0).astype(o_ref.dtype)


# ------------------------------ kernel wrappers ------------------------------
def conv1x1_bn_relu(x_nchw, w, b):
    """x_nchw: (N, Cin, H, W) f32; w: (Cout, Cin); b: (Cout, 1) -> (N, Cout, H, W)."""
    n, cin, h, wd = x_nchw.shape
    cout = w.shape[0]
    hw = h * wd
    t = _pick_tile(hw)
    x3 = x_nchw.reshape(n, cin, hw)  # pure reshape, no transpose

    out3 = pl.pallas_call(
        _conv1x1_bn_relu_kernel,
        out_shape=jax.ShapeDtypeStruct((n, cout, hw), jnp.float32),
        grid_spec=pltpu.PrefetchScalarGridSpec(
            num_scalar_prefetch=0,
            grid=(n, pl.cdiv(hw, t)),
            in_specs=[
                pl.BlockSpec((1, cin, t), lambda b_, t_: (b_, 0, t_)),
                pl.BlockSpec((cout, cin), lambda b_, t_: (0, 0)),
                pl.BlockSpec((cout, 1), lambda b_, t_: (0, 0)),
            ],
            out_specs=pl.BlockSpec((1, cout, t), lambda b_, t_: (b_, 0, t_)),
        ),
        compiler_params=pltpu.CompilerParams(
            dimension_semantics=("parallel", "parallel")),
        cost_estimate=pl.CostEstimate(
            flops=2 * n * hw * cin * cout,
            transcendentals=0,
            bytes_accessed=4 * (n * cin * hw + cin * cout + cout
                                + n * cout * hw)),
    )(x3, w, b)
    return out3.reshape(n, cout, h, wd)


def conv1x1_bn_relu_2in(x1_nchw, x2_nchw, w1, w2, b):
    """Fused concat([x1, x2], dim=1) -> 1x1 conv -> BN -> ReLU."""
    n, c1, h, wd = x1_nchw.shape
    c2 = x2_nchw.shape[1]
    cout = w1.shape[0]
    hw = h * wd
    t = _pick_tile(hw)
    x1_3 = x1_nchw.reshape(n, c1, hw)
    x2_3 = x2_nchw.reshape(n, c2, hw)

    out3 = pl.pallas_call(
        _conv1x1_bn_relu_2in_kernel,
        out_shape=jax.ShapeDtypeStruct((n, cout, hw), jnp.float32),
        grid_spec=pltpu.PrefetchScalarGridSpec(
            num_scalar_prefetch=0,
            grid=(n, pl.cdiv(hw, t)),
            in_specs=[
                pl.BlockSpec((1, c1, t), lambda b_, t_: (b_, 0, t_)),
                pl.BlockSpec((1, c2, t), lambda b_, t_: (b_, 0, t_)),
                pl.BlockSpec((cout, c1), lambda b_, t_: (0, 0)),
                pl.BlockSpec((cout, c2), lambda b_, t_: (0, 0)),
                pl.BlockSpec((cout, 1), lambda b_, t_: (0, 0)),
            ],
            out_specs=pl.BlockSpec((1, cout, t), lambda b_, t_: (b_, 0, t_)),
        ),
        compiler_params=pltpu.CompilerParams(
            dimension_semantics=("parallel", "parallel")),
        cost_estimate=pl.CostEstimate(
            flops=2 * n * hw * (c1 + c2) * cout,
            transcendentals=0,
            bytes_accessed=4 * (n * (c1 + c2) * hw + (c1 + c2) * cout + cout
                                + n * cout * hw)),
    )(x1_3, x2_3, w1, w2, b)
    return out3.reshape(n, cout, h, wd)


# -------------------------- parameters (BN folded) ---------------------------
def make_conv_bn_params(key, cin, cout):
    """Synthetic Conv2d(k=1, bias=False) + eval-mode BatchNorm2d, pre-folded."""
    kw, kg, kb, km, kv = jax.random.split(key, 5)
    w = jax.random.normal(kw, (cout, cin), jnp.float32) / jnp.sqrt(float(cin))
    gamma = 1.0 + 0.1 * jax.random.normal(kg, (cout,), jnp.float32)
    beta = 0.1 * jax.random.normal(kb, (cout,), jnp.float32)
    mean = 0.1 * jax.random.normal(km, (cout,), jnp.float32)
    var = jnp.abs(1.0 + 0.1 * jax.random.normal(kv, (cout,), jnp.float32))
    # TODO(synk): training-mode BatchNorm (batch statistics) is not modeled;
    # eval-mode running stats are folded into scale/bias here.
    scale = gamma / jnp.sqrt(var + BN_EPS)
    w_folded = w * scale[:, None]
    bias = (beta - mean * scale).reshape(cout, 1)
    return dict(w=w_folded, b=bias)


def make_fft_features_params(key, out_planes=NUM_FFT):
    f = out_planes // 4
    k0, k1, k2 = jax.random.split(key, 3)
    p_in = make_conv_bn_params(k0, 3, f)                 # in_conv : 3 -> f
    p_mid = make_conv_bn_params(k1, 2 * f, 2 * f)        # conv    : 2f -> 2f
    p_out = make_conv_bn_params(k2, f, out_planes)       # out_conv: f -> out
    return dict(
        f=f,
        in_w=p_in["w"], in_b=p_in["b"],
        # split middle-conv weights so the real/imag concat is fused in-kernel
        mid_wr=p_mid["w"][:, :f], mid_wi=p_mid["w"][:, f:], mid_b=p_mid["b"],
        out_w=p_out["w"], out_b=p_out["b"])


def make_extra_freq_params(key, num_layers=5):
    # The PyTorch module defines layer0..layer4 but only layer0..layer3 are
    # used in forward(); we mirror that (layer4 params exist but are unused).
    keys = jax.random.split(key, num_layers)
    return [make_fft_features_params(k, NUM_FFT) for k in keys]


# ------------------------ bilinear resize (align_corners=True) ---------------
def _interp_matrix(out_size, in_size):
    """Dense 1-D interpolation matrix with PyTorch align_corners=True mapping."""
    if out_size == 1:
        m = jnp.zeros((1, in_size), jnp.float32)
        return m.at[0, 0].set(1.0)
    src = jnp.arange(out_size, dtype=jnp.float32) * (
        (in_size - 1) / (out_size - 1))
    lo = jnp.clip(jnp.floor(src).astype(jnp.int32), 0, in_size - 1)
    hi = jnp.minimum(lo + 1, in_size - 1)
    frac = src - lo.astype(jnp.float32)
    rows = jnp.arange(out_size)
    m = jnp.zeros((out_size, in_size), jnp.float32)
    m = m.at[rows, lo].add(1.0 - frac)
    m = m.at[rows, hi].add(frac)
    return m


def bilinear_resize_align_corners(x, out_h, out_w):
    """Exact F.interpolate(mode='bilinear', align_corners=True) via two matmuls."""
    # TODO(synk): resize stays as XLA einsums (separable interpolation
    # matrices), not a Pallas kernel.
    _, _, in_h, in_w = x.shape
    a_h = _interp_matrix(out_h, in_h)     # (out_h, in_h)
    a_w = _interp_matrix(out_w, in_w)     # (out_w, in_w)
    y = jnp.einsum("oh,nchw->ncow", a_h, x)
    y = jnp.einsum("pw,ncow->ncop", a_w, y)
    return y


# ------------------------------ FFT_features ---------------------------------
def fft_features_forward(p, img):
    """img: (N, 3, H, W) -> (N, NUM_FFT, H, W)."""
    f = p["f"]
    x = conv1x1_bn_relu(img, p["in_w"], p["in_b"])            # (N, f, H, W)
    # TODO(synk): FFT/IFFT have no Pallas primitive; computed with jnp.fft (XLA).
    x_fft = jnp.fft.fft2(x)                                   # complex64
    # concat(real, imag) is fused into the kernel (two inputs, split weights)
    out_freq = conv1x1_bn_relu_2in(jnp.real(x_fft), jnp.imag(x_fft),
                                   p["mid_wr"], p["mid_wi"], p["mid_b"])
    out_complex = jax.lax.complex(out_freq[:, :f], out_freq[:, f:])
    out = jnp.abs(jnp.fft.ifft2(out_complex))                 # (N, f, H, W)
    out = conv1x1_bn_relu(out, p["out_w"], p["out_b"])        # (N, NUM_FFT, H, W)
    return out


# -------------------------------- ExtraFreq ----------------------------------
def extra_freq_forward(params, x, scales):
    """Mirrors ExtraFreq.forward: list of per-scale (N, NUM_FFT, Hi, Wi)."""
    h, w = x.shape[-2:]
    out = []
    for i, s in enumerate(scales):
        oh = int(math.ceil(h * s))
        ow = int(math.ceil(w * s))
        xi = bilinear_resize_align_corners(x, oh, ow)
        out.append(fft_features_forward(params[i], xi))
    return out


# ----------------------------------- main ------------------------------------
if __name__ == "__main__":
    scales = [1.0, 0.75, 0.5, 0.25]
    batch, height, width = 2, 16, 16

    key = jax.random.PRNGKey(0)
    k_x, k_p = jax.random.split(key)
    x = jax.random.normal(k_x, (batch, 3, height, width), dtype=jnp.float32)
    params = make_extra_freq_params(k_p)

    outs = extra_freq_forward(params, x, scales)
    for o in outs:
        jax.block_until_ready(o)

    # Sanity: per-scale output shapes (NCHW) and ReLU non-negativity.
    for o, s in zip(outs, scales):
        oh, ow = math.ceil(height * s), math.ceil(width * s)
        assert o.shape == (batch, NUM_FFT, oh, ow), o.shape
        assert bool(jnp.all(jnp.isfinite(o)))
        assert bool(jnp.all(o >= 0.0))  # ReLU output

    print("KERNEL_OK")
</pallas_src>

<mosaic_0001>
module attributes {stable_mosaic.version = 11 : i64} {
  func.func @_conv1x1_bn_relu_kernel(%arg0: i32, %arg1: i32, %arg2: memref<1x3x256xf32, #tpu.memory_space<vmem>>, %arg3: memref<4x3xf32, #tpu.memory_space<vmem>>, %arg4: memref<4x1xf32, #tpu.memory_space<vmem>>, %arg5: memref<1x4x256xf32, #tpu.memory_space<vmem>>) attributes {dimension_semantics = [#tpu.dimension_semantics<parallel>, #tpu.dimension_semantics<parallel>], iteration_bounds = array<i64: 2, 1>, scalar_prefetch = 0 : i64, scratch_operands = 0 : i64, tpu.core_type = #tpu.core_type<tc>, window_params = [{transform_indices = @transform_0, window_bounds = array<i64: 1, 3, 256>}, {pipeline_mode = #tpu.pipeline_mode<synchronous>, transform_indices = @transform_1, window_bounds = array<i64: 4, 3>}, {pipeline_mode = #tpu.pipeline_mode<synchronous>, transform_indices = @transform_2, window_bounds = array<i64: 4, 1>}, {transform_indices = @transform_3, window_bounds = array<i64: 1, 4, 256>}]} {
    %c0 = arith.constant 0 : index
    %c0_0 = arith.constant 0 : index
    %0 = vector.load %arg3[%c0, %c0_0] : memref<4x3xf32, #tpu.memory_space<vmem>>, vector<4x3xf32>
    %c0_1 = arith.constant 0 : index
    %c0_2 = arith.constant 0 : index
    %c0_3 = arith.constant 0 : index
    %1 = vector.load %arg2[%c0_1, %c0_2, %c0_3] : memref<1x3x256xf32, #tpu.memory_space<vmem>>, vector<1x3x256xf32>
    %2 = vector.shape_cast %1 : vector<1x3x256xf32> to vector<3x256xf32>
    %cst = arith.constant dense<0.000000e+00> : vector<4x256xf32>
    %3 = tpu.matmul %0, %2, %cst {dimension_numbers = #tpu.dot_dimension_numbers<[1], [0], [0], [1], [0, 0, 1, 1], [], []>} : vector<4x3xf32>, vector<3x256xf32>, vector<4x256xf32> -> vector<4x256xf32>
    %c0_4 = arith.constant 0 : index
    %c0_5 = arith.constant 0 : index
    %4 = vector.load %arg4[%c0_4, %c0_5] : memref<4x1xf32, #tpu.memory_space<vmem>>, vector<4x1xf32>
    %5 = vector.broadcast %4 : vector<4x1xf32> to vector<4x256xf32>
    %6 = arith.addf %3, %5 : vector<4x256xf32>
    %cst_6 = arith.constant 0.000000e+00 : f32
    %7 = vector.broadcast %cst_6 : f32 to vector<4x256xf32>
    %8 = arith.maximumf %6, %7 : vector<4x256xf32>
    %c0_7 = arith.constant 0 : index
    %c0_8 = arith.constant 0 : index
    %c0_9 = arith.constant 0 : index
    %9 = vector.load %arg5[%c0_7, %c0_8, %c0_9] : memref<1x4x256xf32, #tpu.memory_space<vmem>>, vector<1x4x256xf32>
    %10 = vector.shape_cast %9 : vector<1x4x256xf32> to vector<4x256xf32>
    %11 = vector.shape_cast %8 : vector<4x256xf32> to vector<1x4x256xf32>
    tpu.vector_store %arg5[%c0_7, %c0_8, %c0_9], %11 {strides = array<i32>} : memref<1x4x256xf32, #tpu.memory_space<vmem>>, vector<1x4x256xf32>,
    return
  }
  func.func @transform_0(%arg0: i32, %arg1: i32) -> (i32, i32, i32) {
    %c0_i32 = arith.constant 0 : i32
    %c0_i32_0 = arith.constant 0 : i32
    return %arg0, %c0_i32, %arg1 : i32, i32, i32
  }
  func.func @transform_1(%arg0: i32, %arg1: i32) -> (i32, i32) {
    %c0_i32 = arith.constant 0 : i32
    %c0_i32_0 = arith.constant 0 : i32
    %c0_i32_1 = arith.constant 0 : i32
    return %c0_i32, %c0_i32_0 : i32, i32
  }
  func.func @transform_2(%arg0: i32, %arg1: i32) -> (i32, i32) {
    %c0_i32 = arith.constant 0 : i32
    %c0_i32_0 = arith.constant 0 : i32
    %c0_i32_1 = arith.constant 0 : i32
    return %c0_i32, %c0_i32_0 : i32, i32
  }
  func.func @transform_3(%arg0: i32, %arg1: i32) -> (i32, i32, i32) {
    %c0_i32 = arith.constant 0 : i32
    %c0_i32_0 = arith.constant 0 : i32
    return %arg0, %c0_i32, %arg1 : i32, i32, i32
  }
}

</mosaic_0001>

<bundles_post_ra>
// kernel: tpu_custom_call.1
= control target key start
LH: loop header
LB: loop body
LE: loop exit
PB: predicated region body
PF: predicated region fallthrough
CT: control target
= control target key end

     0   :  { %8 = vsyncpa [#allocation3], 0  ;;  %s645_s0 = inlined_call_operand.vmem [shape: f32[2,3,256], index: 0, kind: input, shape index: {}]   ;;  %s646_s1 = inlined_call_operand.vmem [shape: f32[4,3], index: 1, kind: input, shape index: {}]   ;;  %s647_s2 = inlined_call_operand.vmem [shape: f32[4,1], index: 2, kind: input, shape index: {}]   ;;  %s648_s3 = inlined_call_operand.hbm [shape: f32[2,4,256], index: 3, kind: output, shape index: {}]  }
   0x1   :  { %10 = vsyncpa [#allocation3 + $0x1], 0  ;;  %s542_s12 = smov 0   ;;  %s544_s13 = smov 0  }
   0x2   :  { %s546_s14 = smov 0   ;;  %s548_s15 = smov 0  }
   0x3   :  { %s550_s16 = smov 0   ;;  %s552_s17 = smov 0  }
   0x4 LB: > { %s365_s18 = sadd.s32 4294967295, %s519_s17   ;;  %s366_s19 = sadd.s32 4294967294, %s519_s17   ;;  %s519_s17 = sphi %s552_s17, %s16_s17   ;;  %s515_s16 = sphi %s550_s16, %s655_s16   ;;  %s511_s15 = sphi %s548_s15, %s654_s15   ;;  %s507_s14 = sphi %s546_s14, %s653_s14   ;;  %s503_s13 = sphi %s544_s13, %s652_s13   ;;  %s499_s12 = sphi %s542_s12, %s651_s12  }
   0x5   : > { %s28_s20 = sadd.s32 1, %s515_s16  ;;  %s107_s21 = sadd.s32 1, %s507_s14 }
   0x6   : > { %p30_p0 = scmp.ge.s32.totalorder %s28_s20, 2  ;;  %p117_p1 = scmp.ne.s32.totalorder %s507_s14, %s503_s13 }
   0x7   : > { %p118_p2 = scmp.eq.s32.totalorder %s365_s18, 1  ;;  %p123_p3 = scmp.ne.s32.totalorder %s503_s13, %s499_s12 }
   0x8   : > { %s657_s20 = smov (%p30_p0, %s28_s20), 0  ;;  %p124_p5 = scmp.eq.s32.totalorder %s366_s19, 1 }
   0x9   : > { %p582_p4 = por %p118_p2, %p117_p1  ;;  %s102_s23 = ssub.s32 %s515_s16, %s657_s20 }
   0xa   : > { %p369_p6 = scmp.ge.s32.totalorder %s519_s17, 1  ;;  %p105_p7 = scmp.eq.s32.totalorder %s102_s23, 0 }
   0xb   : > { %p589_p8 = por %p124_p5, %p123_p3  ;;  %p161_p9 = scmp.lt.s32.totalorder %s519_s17, 3 }
   0xc   : > { %s595_s25 = scalar_select %p105_p7, %s507_s14, %s107_s21  }
   0xd   : > { %p162_p10 = pnand %p369_p6, %p161_p9 }
   0xe   : > { %p190_p11 = scmp.lt.s32.totalorder (!%p162_p10), %s511_s15, 1  ;;  %s186_s8 = sand.u32 (!%p162_p10), 1, %s503_s13  }
   0xf   : > { %165 = sbr.rel (%p162_p10) target bundleno = 170 (0xaa), region = 32  ;;  %s370_s9 = sshll.u32 (!%p162_p10), %s186_s8, 3 }
  0x10   : > { %s383_s10 = sshll.u32 (!%p162_p10), %s511_s15, 3  ;;  %s188_s21 = scalar_lea.vmem (!%p162_p10), [#allocation2], %s370_s9 }
  0x11   : > { %s284_s19 = scalar_lea.hbm (!%p162_p10), %s648_s3, %s383_s10  ;;  %s286_s23 = sshll.u32 (!%p162_p10), %s188_s21, 4  ;;  %s287_s23 = int_to_ptr.vmem [resolvable:$true] %s286_s23 }
  0x12   : > { %s288_s26 = sshll.u32 (!%p162_p10), %s284_s19, 4  ;;  %s461_s4 = scalar_lea.hbm (!%p162_p10), %s648_s3, 16  ;;  %s289_s26 = int_to_ptr.hbm [resolvable:$true] %s288_s26 }
  0x13   : > { %s455_s27 = sshra.s32 (!%p162_p10), %s289_s26, 4  ;;  %s456_s27 = int_to_ptr.hbm [resolvable:$true] %s455_s27 }
  0x14   : > { %v521_v0 = vmov 0   ;;  %v202_v1 = vld [vmem:[%s647_s2] sm:$0xf]  ;;  %s191_s28 = scalar_select %p190_p11, %s511_s15, 1  ;;  %vm216_vm0 = vcmask 1042432   ;;  %vm212_vm1 = vcmask 23552  }
  0x15   : > { %440 = vset.pattern.permute.xlu0 %v521_v0  ;;  %v200_v3 = vld [vmem:[%s646_s1] sm:$0xf]  ;;  %vm266_vm2 = vcmask 1043456   ;;  %s271_s15 = scalar_lea.sflag [#allocation3], %s186_s8  ;;  %p462_p1 = scmp.lt.s32.totalorder %s456_s27, %s648_s3 }
  0x16   : > { %205 = vperm.xlu0 %440, %v202_v1   ;;  %s382_s29 = sshll.u32 %s191_s28, 3  ;;  %s457_s28 = scalar_lea.hbm %s456_s27, 8 }
  0x17   : > { %s197_s5 = scalar_lea.vmem %s645_s0, %s382_s29  ;;  %p458_p12 = scmp.ne.s32.totalorder %s456_s27, %s457_s28 }
  0x18   : > { %v201_v2 = vld [vmem:[%s197_s5] sm:$0x77]  ;;  %p463_p2 = scmp.lt.s32.totalorder %s461_s4, %s457_s28 }
  0x19   : > { %209 = vst [vmem:[#allocation1] ss:$2 sm:$0xff] %v201_v2  ;;  %p459_p13 = pnand %p458_p12, %p582_p4 }
  0x1a   : > { %p464_p3 = por %p463_p2, %p462_p1 }
  0x1b   : > { %p460_p0 = pneg %p459_p13 }
  0x1d   : > { %p465_p5 = pnand %p464_p3, %p460_p0 }
  0x20   : > { %v210_v4 = vld.sshfl [vmem:[#allocation1] sm:$0xff pattern:$0x75316420]  ;;  %v211_v5 = vld.sshfl [vmem:[#allocation1 + $0x8] sm:$0xff pattern:$0x75316420] }
  0x21   : > { %373 = vmatpush.msk.msra.mxu0 %vm216_vm0, %v210_v4  ;;  %375 = vmatpush.msk.msra.mxu1 %vm216_vm0, %v211_v5 }
  0x22   : > { %374 = vmatmul.msk.f32.vlgmr.msra.gmra.mxu0 %vm212_vm1, %v200_v3  ;;  %376 = vmatmul.msk.f32.vlgmr.msra.gmra.mxu1 %vm212_vm1, %v200_v3 }
  0x88   : > { %v206_v6 = vpop.permute.xlu0 %205 }
  0x9f   : > { %v238_v7 = vpop.f32.mrf.mxu0  ;;  %v258_v8 = vpop.f32.mrf.mxu1 }
  0xa0   : > { %v239_v9 = vadd.f32 %v238_v7, %v206_v6  ;;  %v259_v10 = vadd.f32 %v258_v8, %v206_v6 }
  0xa2   : > { %v262_v11 = vmax.f32 %v259_v10, 0.0  ;;  %v261_v12 = vmax.f32 %v239_v9, 0.0 }
  0xa4   : > { %v265_v13 = vrot.slane %v262_v11, 4 }
  0xa6   : > { %v267_v14 = vsel %vm266_vm2, %v261_v12, %v265_v13 }
  0xa7   : > { %269 = vst [vmem:[%s188_s21] sm:$0xff] %v267_v14 }
  0xa8   : > { %468 = shalt.err (!%p465_p5)
}
  0xa9   : > { %384 = dma.vmem_to_hbm [thread:$0]  (%p582_p4), %s287_s23, 128, %s289_s26, %s271_s15  }
  0xaa PF: > { %p390_p6 = scmp.ge.s32.totalorder %s519_s17, 2  ;;  %s300_s7 = sand.u32 1, %s499_s12  }
  0xab   : > { %s301_s8 = scalar_lea.sflag [#allocation3], %s300_s7 }
  0xac   : > { %p387_p7 = pnand %p390_p6, %p589_p8 }
  0xae   : > { %p388_p9 = pneg %p387_p7 }
  0xb0   : > { %494 = dma.done.wait (%p388_p9), %s301_s8, 128  }
  0xb1   : > { %496 = vsyncadd (%p388_p9), %s301_s8, 4294967168  ;;  %s16_s17 = sadd.s32 1, %s519_s17   ;;  %s651_s12 = smov %s503_s13 }
  0xb2   : > { %p13_p10 = scmp.ge.s32.totalorder %s16_s17, 4   ;;  %s652_s13 = smov %s507_s14 }
  0xb3   : > { %s653_s14 = smov %s595_s25  ;;  %s654_s15 = smov %s515_s16 }
  0xb4   : > { %s655_s16 = smov %s657_s20  ;;  %15 = sbr.rel (!%p13_p10) target bundleno = 4 (0x4), region = 67 }
  0xb9   :  { %307 = vsyncpa [#allocation3], 1 }
  0xba   :  { %309 = vsyncpa [#allocation3 + $0x1], 1 }

</bundles_post_ra>
